<compile_context>
chip_gen: v6e
topology: v6e:2x2x1
jax: 0.10.0
libtpu: 0.0.40
codegen_flags: <defaults>
</compile_context>

<pallas_src>
import jax
import jax.numpy as jnp
from jax.experimental import pallas as pl
from jax.experimental.pallas import tpu as pltpu

POOL_OUT = 330          # fixed by the module (AdaptiveAvgPool2d((1, 330)))
NUM_CLASSES = 165       # module default


# --------------------------------------------------------------------------- #
# Helpers
# --------------------------------------------------------------------------- #
def _round_up(a: int, m: int) -> int:
    return -(-a // m) * m


def _adaptive_pool_matrix(w_in: int, w_out: int) -> jnp.ndarray:
    """(w_in, w_out) matrix P such that  x @ P == AdaptiveAvgPool1d(w_out)(x).

    Uses PyTorch's exact bin arithmetic:
      start_i = floor(i * w_in / w_out),  end_i = ceil((i + 1) * w_in / w_out)
    """
    i = jnp.arange(w_out, dtype=jnp.int32)
    starts = (i * w_in) // w_out
    ends = ((i + 1) * w_in + w_out - 1) // w_out            # ceil div
    w_idx = jnp.arange(w_in, dtype=jnp.int32)[:, None]       # (w_in, 1)
    mask = (w_idx >= starts[None, :]) & (w_idx < ends[None, :])
    counts = (ends - starts).astype(jnp.float32)              # (w_out,)
    return mask.astype(jnp.float32) / counts[None, :]          # (w_in, w_out)


def _vmem_capacity_bytes() -> int:
    """Physical VMEM per TensorCore; conservative default if the query fails."""
    try:
        cap = int(pltpu.get_tpu_info().vmem_capacity_bytes)
        if cap > 0:
            return cap
    except Exception:
        pass
    return 64 * 1024 * 1024        # v7x per-core size (most restrictive)


def _vmem_budget_bytes(capacity: int) -> int:
    """Usable budget for our buffers: ~48 MiB on v7x, ~96 MiB on v5e/v6e."""
    return min(int(capacity * 3 // 4), 96 * 1024 * 1024)


def _block_spec(shape, index_map, *, single_buffer=False):
    """BlockSpec; optionally single-buffered (constant index_map operands)."""
    if single_buffer and hasattr(pl, "Buffered"):
        try:
            return pl.BlockSpec(shape, index_map, pipeline_mode=pl.Buffered(1))
        except TypeError:            # very old BlockSpec signature
            pass
    return pl.BlockSpec(shape, index_map)


def _plan_tiles(nc: int, hw: int, itemsize: int, k_pad: int,
                budget: int, weight_single_buffer: bool):
    """Pick (tile_nc, tile_hw) so all per-step VMEM buffers fit `budget`.

    Accounts for: 2x x tile, weight buffer(s), 2x output tile, f32 accumulator
    and the (tiny) bias buffers.
    """
    def fixed_bytes(t_nc):
        return (t_nc * k_pad * 4            # f32 accumulator scratch
                + 2 * t_nc * k_pad * 4      # output tile, double-buffered (f32 bound)
                + 2 * 8 * k_pad * 4)        # bias (padded to 8 sublanes), 2 buffers

    # Initial NC tile: lane/sublane friendly, capped at 512 rows, and >= 2 grid
    # steps for large NC so both v7x TensorCores are fed.
    if nc <= 256:
        mult = 8 if itemsize >= 4 else 16            # bf16 sublane packing
        tile_nc = _round_up(max(nc, 8), mult)
    else:
        tile_nc = min(512, _round_up(pl.cdiv(nc, 2), 128))

    n_w = 1 if weight_single_buffer else 2
    while True:
        fixed = fixed_bytes(tile_nc)
        # Option A: full-HW contraction, weight resident (grid_hw == 1).
        if fixed + n_w * hw * k_pad * itemsize + 2 * tile_nc * hw * itemsize <= budget:
            return tile_nc, hw
        # Option B: tile the HW contraction (inner "arbitrary" reduction axis);
        # both x and weight blocks are double-buffered along that axis.
        avail = budget - fixed
        per_col = 2 * (tile_nc + k_pad) * itemsize
        if avail > 0:
            tile_hw = min(_round_up(hw, 128), (avail // per_col) // 128 * 128)
            if tile_hw >= 128:
                return tile_nc, int(tile_hw)
        # Does not fit: shrink the NC tile and retry.
        if tile_nc > 128:
            tile_nc = max(128, _round_up(tile_nc // 2, 128))
        elif tile_nc > 8:
            tile_nc = max(8, _round_up(tile_nc // 2, 8))
        else:
            return 8, max(128, min(hw, 128)) if hw >= 128 else hw


# --------------------------------------------------------------------------- #
# Kernel
# --------------------------------------------------------------------------- #
def _classifier_kernel(x_ref, w_ref, b_ref, o_ref, acc_ref):
    # x_ref:  (TILE_NC, TILE_HW)   streamed input tile (bf16 or f32)
    # w_ref:  (TILE_HW, K_pad)     fused (mean_H . pool_W . linear) weight
    # b_ref:  (1, K_pad)           zero-padded bias (f32)
    # o_ref:  (TILE_NC, K_pad)     output logits (f32 or bf16)
    # acc_ref:(TILE_NC, K_pad)     f32 accumulator across the HW reduction axis
    j = pl.program_id(1)

    @pl.when(j == 0)
    def _():
        acc_ref[...] = jnp.zeros_like(acc_ref)

    acc_ref[...] += jnp.dot(x_ref[...], w_ref[...],
                            preferred_element_type=jnp.float32)

    @pl.when(j == pl.num_programs(1) - 1)
    def _():
        o_ref[...] = (acc_ref[...] + b_ref[...]).astype(o_ref.dtype)


# --------------------------------------------------------------------------- #
# Wrapper
# --------------------------------------------------------------------------- #
def peg_attentive_classifier(x, lin_weight, lin_bias, *,
                             compute_dtype=jnp.bfloat16):
    """x: (N, C, H, W).  Returns (N, C, 1, num_classes) float32."""
    n, c, h, w = x.shape
    nc, hw = n * c, h * w
    k = lin_weight.shape[0]
    k_pad = _round_up(k, 128)                                  # 165 -> 256
    compute_dtype = jnp.dtype(compute_dtype)
    itemsize = compute_dtype.itemsize

    # ---- fold mean-over-H + adaptive-pool-over-W + linear into one weight ----
    pool_w = _adaptive_pool_matrix(w, POOL_OUT)                 # (W, 330)
    pool_hw = jnp.tile(pool_w, (h, 1)) / float(h)               # (H*W, 330)
    fused = pool_hw @ lin_weight.astype(jnp.float32).T          # (H*W, K) f32
    fused = jnp.pad(fused, ((0, 0), (0, k_pad - k))).astype(compute_dtype)
    bias = jnp.pad(lin_bias.astype(jnp.float32),
                   (0, k_pad - k)).reshape(1, k_pad)            # (1, K_pad) f32

    # ---- generation-aware VMEM plan ----
    capacity = _vmem_capacity_bytes()
    budget = _vmem_budget_bytes(capacity)
    use_single_buf = hasattr(pl, "Buffered")
    tile_nc, tile_hw = _plan_tiles(nc, hw, itemsize, k_pad, budget,
                                   use_single_buf)

    grid_nc = pl.cdiv(nc, tile_nc)
    grid_hw = pl.cdiv(hw, tile_hw)
    nc_pad = grid_nc * tile_nc
    hw_pad = grid_hw * tile_hw

    # ---- flatten / zero-pad x and the weight to the tile grid ----
    x_flat = x.reshape(nc, hw).astype(compute_dtype)
    if (nc_pad, hw_pad) != (nc, hw):
        x_flat = jnp.pad(x_flat, ((0, nc_pad - nc), (0, hw_pad - hw)))
    if hw_pad != hw:
        fused = jnp.pad(fused, ((0, hw_pad - hw), (0, 0)))

    # ---- output dtype: bf16 logits in the small-HW (write-bound) regime ----
    small_hw = hw * itemsize <= k_pad * 4       # per-row reads <= f32 writes
    if small_hw and compute_dtype != jnp.dtype(jnp.float32):
        out_dtype = compute_dtype
    else:
        out_dtype = jnp.dtype(jnp.float32)
    out_itemsize = jnp.dtype(out_dtype).itemsize

    # ---- BlockSpecs (weight/bias single-buffered when index is constant) ----
    x_spec = pl.BlockSpec((tile_nc, tile_hw), lambda i, j: (i, j))
    w_spec = _block_spec((tile_hw, k_pad), lambda i, j: (j, 0),
                         single_buffer=(grid_hw == 1))
    b_spec = _block_spec((1, k_pad), lambda i, j: (0, 0), single_buffer=True)
    o_spec = pl.BlockSpec((tile_nc, k_pad), lambda i, j: (i, 0))

    # ---- full VMEM accounting -> vmem_limit_bytes ----
    n_w_buf = 1 if (use_single_buf and grid_hw == 1) else 2
    planned = (2 * tile_nc * tile_hw * itemsize          # x, double-buffered
               + n_w_buf * tile_hw * k_pad * itemsize    # fused weight
               + 2 * tile_nc * k_pad * out_itemsize      # output, double-buffered
               + tile_nc * k_pad * 4                     # f32 accumulator
               + 2 * 8 * k_pad * 4)                      # bias
    vmem_limit = int(min(max(planned + (8 << 20), 32 << 20),
                         capacity - (4 << 20)))

    weight_read_bytes = hw_pad * k_pad * itemsize * (1 if grid_hw == 1 else grid_nc)
    cost = pl.CostEstimate(
        flops=2 * nc_pad * hw_pad * k_pad,
        transcendentals=0,
        bytes_accessed=(nc_pad * hw_pad * itemsize        # read x
                        + weight_read_bytes               # read fused weight
                        + nc_pad * k_pad * out_itemsize)) # write logits

    out = pl.pallas_call(
        _classifier_kernel,
        out_shape=jax.ShapeDtypeStruct((nc_pad, k_pad), out_dtype),
        grid=(grid_nc, grid_hw),
        in_specs=[x_spec, w_spec, b_spec],
        out_specs=o_spec,
        scratch_shapes=[pltpu.VMEM((tile_nc, k_pad), jnp.float32)],
        compiler_params=pltpu.CompilerParams(
            dimension_semantics=("parallel", "arbitrary"),
            vmem_limit_bytes=vmem_limit),
        cost_estimate=cost,
    )(x_flat, fused, bias)

    return out[:nc, :k].astype(jnp.float32).reshape(n, c, 1, k)


# --------------------------------------------------------------------------- #
# Pure-JAX reference (mirrors the PyTorch module)
# --------------------------------------------------------------------------- #
def _reference(x, lin_weight, lin_bias):
    n, c, h, w = x.shape
    pool_mat = _adaptive_pool_matrix(w, POOL_OUT)                 # (W, 330)
    xh = jnp.mean(x.astype(jnp.float32), axis=2)                  # (N, C, W)
    pooled = jnp.einsum("ncw,wo->nco", xh, pool_mat)              # (N, C, 330)
    out = pooled @ lin_weight.astype(jnp.float32).T               # (N, C, K)
    out = out + lin_bias.astype(jnp.float32)[None, None, :]
    return out[:, :, None, :]                                     # (N, C, 1, K)


if __name__ == "__main__":
    key = jax.random.PRNGKey(0)
    k_x, k_w, k_b, k_x2 = jax.random.split(key, 4)

    # Small shapes consistent with the module's forward (NCHW input).
    N, C, H, W = 2, 4, 16, 16
    x = jax.random.normal(k_x, (N, C, H, W), dtype=jnp.float32)

    # Deterministic synthetic parameters (nn.Linear(330, 165) shapes).
    lin_weight = jax.random.normal(k_w, (NUM_CLASSES, POOL_OUT),
                                   dtype=jnp.float32) * 0.02
    lin_bias = jax.random.normal(k_b, (NUM_CLASSES,), dtype=jnp.float32) * 0.02

    ref = jax.block_until_ready(_reference(x, lin_weight, lin_bias))

    # Exact-semantics check with the f32 compute path.
    out_f32 = jax.block_until_ready(
        peg_attentive_classifier(x, lin_weight, lin_bias,
                                 compute_dtype=jnp.float32))
    assert out_f32.shape == (N, C, 1, NUM_CLASSES), out_f32.shape
    assert jnp.allclose(out_f32, ref, atol=1e-4, rtol=1e-4), (
        float(jnp.max(jnp.abs(out_f32 - ref))))

    # Default fast path (bf16 inputs + bf16 logits, f32 MXU accumulation).
    out_bf = jax.block_until_ready(peg_attentive_classifier(x, lin_weight, lin_bias))
    assert out_bf.shape == (N, C, 1, NUM_CLASSES), out_bf.shape
    assert jnp.allclose(out_bf, ref, atol=3e-2, rtol=3e-2), (
        float(jnp.max(jnp.abs(out_bf - ref))))

    # Multi-tile path (grid_nc > 1, NC padding) on a modest shape.
    N2, C2 = 4, 70
    x2 = jax.random.normal(k_x2, (N2, C2, H, W), dtype=jnp.float32)
    ref2 = jax.block_until_ready(_reference(x2, lin_weight, lin_bias))
    out2 = jax.block_until_ready(
        peg_attentive_classifier(x2, lin_weight, lin_bias,
                                 compute_dtype=jnp.float32))
    assert out2.shape == (N2, C2, 1, NUM_CLASSES), out2.shape
    assert jnp.allclose(out2, ref2, atol=1e-4, rtol=1e-4), (
        float(jnp.max(jnp.abs(out2 - ref2))))

    print("KERNEL_OK")
</pallas_src>

<mosaic_0001>
module attributes {stable_mosaic.version = 11 : i64} {
  func.func @_classifier_kernel(%arg0: i32, %arg1: i32, %arg2: memref<8x256xf32, #tpu.memory_space<vmem>>, %arg3: memref<256x256xf32, #tpu.memory_space<vmem>>, %arg4: memref<1x256xf32, #tpu.memory_space<vmem>>, %arg5: memref<8x256xf32, #tpu.memory_space<vmem>>, %arg6: memref<8x256xf32, #tpu.memory_space<vmem>>) attributes {dimension_semantics = [#tpu.dimension_semantics<parallel>, #tpu.dimension_semantics<arbitrary>], iteration_bounds = array<i64: 1, 1>, scalar_prefetch = 0 : i64, scratch_operands = 1 : i64, tpu.core_type = #tpu.core_type<tc>, window_params = [{transform_indices = @transform_0, window_bounds = array<i64: 8, 256>}, {pipeline_mode = #tpu.pipeline_mode<synchronous>, transform_indices = @transform_1, window_bounds = array<i64: 256, 256>}, {pipeline_mode = #tpu.pipeline_mode<synchronous>, transform_indices = @transform_2, window_bounds = array<i64: 1, 256>}, {transform_indices = @transform_3, window_bounds = array<i64: 8, 256>}]} {
    %c0_i32 = arith.constant 0 : i32
    %0 = arith.cmpi eq, %arg1, %c0_i32 : i32
    %1 = arith.extui %0 : i1 to i32
    %c0_i32_0 = arith.constant 0 : i32
    %2 = arith.cmpi ne, %1, %c0_i32_0 : i32
    scf.if %2 {
      %cst_10 = arith.constant 0.000000e+00 : f32
      %12 = vector.broadcast %cst_10 : f32 to vector<8x256xf32>
      %c0_11 = arith.constant 0 : index
      %c0_12 = arith.constant 0 : index
      %13 = vector.load %arg6[%c0_11, %c0_12] : memref<8x256xf32, #tpu.memory_space<vmem>>, vector<8x256xf32>
      tpu.vector_store %arg6[%c0_11, %c0_12], %12 {strides = array<i32>} : memref<8x256xf32, #tpu.memory_space<vmem>>, vector<8x256xf32>,
    } else {
    }
    %c0 = arith.constant 0 : index
    %c0_1 = arith.constant 0 : index
    %3 = vector.load %arg6[%c0, %c0_1] : memref<8x256xf32, #tpu.memory_space<vmem>>, vector<8x256xf32>
    %c0_2 = arith.constant 0 : index
    %c0_3 = arith.constant 0 : index
    %4 = vector.load %arg2[%c0_2, %c0_3] : memref<8x256xf32, #tpu.memory_space<vmem>>, vector<8x256xf32>
    %c0_4 = arith.constant 0 : index
    %c0_5 = arith.constant 0 : index
    %5 = vector.load %arg3[%c0_4, %c0_5] : memref<256x256xf32, #tpu.memory_space<vmem>>, vector<256x256xf32>
    %cst = arith.constant dense<0.000000e+00> : vector<8x256xf32>
    %6 = tpu.matmul %4, %5, %cst {dimension_numbers = #tpu.dot_dimension_numbers<[1], [0], [0], [1], [0, 0, 1, 1], [], []>} : vector<8x256xf32>, vector<256x256xf32>, vector<8x256xf32> -> vector<8x256xf32>
    %7 = arith.addf %3, %6 : vector<8x256xf32>
    %c0_6 = arith.constant 0 : index
    %c0_7 = arith.constant 0 : index
    %8 = vector.load %arg6[%c0_6, %c0_7] : memref<8x256xf32, #tpu.memory_space<vmem>>, vector<8x256xf32>
    tpu.vector_store %arg6[%c0_6, %c0_7], %7 {strides = array<i32>} : memref<8x256xf32, #tpu.memory_space<vmem>>, vector<8x256xf32>,
    %c0_i32_8 = arith.constant 0 : i32
    %9 = arith.cmpi eq, %arg1, %c0_i32_8 : i32
    %10 = arith.extui %9 : i1 to i32
    %c0_i32_9 = arith.constant 0 : i32
    %11 = arith.cmpi ne, %10, %c0_i32_9 : i32
    scf.if %11 {
      %c0_10 = arith.constant 0 : index
      %c0_11 = arith.constant 0 : index
      %12 = vector.load %arg6[%c0_10, %c0_11] : memref<8x256xf32, #tpu.memory_space<vmem>>, vector<8x256xf32>
      %c0_12 = arith.constant 0 : index
      %c0_13 = arith.constant 0 : index
      %13 = vector.load %arg4[%c0_12, %c0_13] : memref<1x256xf32, #tpu.memory_space<vmem>>, vector<1x256xf32>
      %14 = vector.broadcast %13 : vector<1x256xf32> to vector<8x256xf32>
      %15 = arith.addf %12, %14 : vector<8x256xf32>
      %c0_14 = arith.constant 0 : index
      %c0_15 = arith.constant 0 : index
      %16 = vector.load %arg5[%c0_14, %c0_15] : memref<8x256xf32, #tpu.memory_space<vmem>>, vector<8x256xf32>
      tpu.vector_store %arg5[%c0_14, %c0_15], %15 {strides = array<i32>} : memref<8x256xf32, #tpu.memory_space<vmem>>, vector<8x256xf32>,
    } else {
    }
    return
  }
  func.func @transform_0(%arg0: i32, %arg1: i32) -> (i32, i32) {
    %c0_i32 = arith.constant 0 : i32
    return %arg0, %arg1 : i32, i32
  }
  func.func @transform_1(%arg0: i32, %arg1: i32) -> (i32, i32) {
    %c0_i32 = arith.constant 0 : i32
    %c0_i32_0 = arith.constant 0 : i32
    return %arg1, %c0_i32 : i32, i32
  }
  func.func @transform_2(%arg0: i32, %arg1: i32) -> (i32, i32) {
    %c0_i32 = arith.constant 0 : i32
    %c0_i32_0 = arith.constant 0 : i32
    %c0_i32_1 = arith.constant 0 : i32
    return %c0_i32, %c0_i32_0 : i32, i32
  }
  func.func @transform_3(%arg0: i32, %arg1: i32) -> (i32, i32) {
    %c0_i32 = arith.constant 0 : i32
    %c0_i32_0 = arith.constant 0 : i32
    return %arg0, %c0_i32 : i32, i32
  }
}

</mosaic_0001>

<bundles_post_ra>
// kernel: tpu_custom_call.1
= control target key start
LH: loop header
LB: loop body
LE: loop exit
PB: predicated region body
PF: predicated region fallthrough
CT: control target
= control target key end

     0   :  { %8 = vsyncpa [#allocation4], 0  ;;  %s335_s0 = inlined_call_operand.hbm [shape: f32[8,256], index: 0, kind: input, shape index: {}]   ;;  %s336_s1 = inlined_call_operand.hbm [shape: f32[256,256], index: 1, kind: input, shape index: {}]   ;;  %s337_s2 = inlined_call_operand.vmem [shape: f32[1,256], index: 2, kind: input, shape index: {}]   ;;  %s338_s3 = inlined_call_operand.hbm [shape: f32[8,256], index: 3, kind: output, shape index: {}]  }
   0x1   :  { %9 = vsyncpa [#allocation7], 0 }
   0x2   :  { %10 = vsyncpa [#allocation5], 0  ;;  %s298_s12 = smov [#allocation3]   ;;  %s299_s14 = smov [#allocation6]  }
   0x3   :  { %s17_s13 = sshll.u32 %s298_s12, 4  ;;  %s26_s15 = sshll.u32 %s299_s14, 4  ;;  %s18_s13 = int_to_ptr.vmem [resolvable:$true] %s17_s13  ;;  %s27_s15 = int_to_ptr.vmem [resolvable:$true] %s26_s15 }
   0x4   :  { %s240_s16 = scalar_lea.vmem %s18_s13, 256  ;;  %p245_p1 = scmp.lt.s32.totalorder %s18_s13, %s18_s13 }
   0x5   :  { %p241_p0 = scmp.ne.s32.totalorder %s18_s13, %s240_s16  ;;  %p246_p2 = scmp.lt.s32.totalorder %s240_s16, %s240_s16 }
   0x7   :  { %p247_p3 = por %p246_p2, %p245_p1 }
   0x9   :  { %p248_p4 = pnand %p247_p3, %p241_p0 }
   0xb   :  { %251 = shalt.err (!%p248_p4)
}
   0xc   :  { %20 = dma.hbm_to_vmem [thread:$0]  %s335_s0, 256, %s18_s13, [#allocation4]  }
   0xd   :  { %s260_s19 = scalar_lea.vmem %s27_s15, 8192  ;;  %p265_p6 = scmp.lt.s32.totalorder %s27_s15, %s27_s15 }
   0xe   :  { %p261_p5 = scmp.ne.s32.totalorder %s27_s15, %s260_s19  ;;  %p266_p7 = scmp.lt.s32.totalorder %s260_s19, %s260_s19 }
  0x10   :  { %p267_p8 = por %p266_p7, %p265_p6 }
  0x12   :  { %p268_p9 = pnand %p267_p8, %p261_p5 }
  0x14   :  { %271 = shalt.err (!%p268_p9)
}
  0x15   :  { %s300_s20 = smov 256   ;;  %s301_s21 = smov 16  }
  0x16   :  { %32 = dma.hbm_to_vmem [thread:$0]  %s336_s1, 8192, %s27_s15, [#allocation7], %s300_s20, %s300_s20, %s301_s21  }
  0x17   :  { %292 = dma.done.wait [#allocation4], 256  }
  0x18   :  { %293 = vsyncadd [#allocation4], 4294967040 }
  0x19   :  { %294 = dma.done.wait [#allocation7], 8192  }
  0x1a   :  { %295 = vsyncadd [#allocation7], 4294959104  ;;  %v82_v0 = vld [vmem:[#allocation6 + $0xf8] sm:$0xff]  ;;  %v81_v1 = vld [vmem:[#allocation6 + $0xf0] sm:$0xff]  ;;  %s302_s24 = smov [#allocation8]  }
  0x1b   :  { %v80_v2 = vld [vmem:[#allocation6 + $0xe8] sm:$0xff]  ;;  %115 = vmatprep.subr.mxu0 %v82_v0  ;;  %v79_v3 = vld [vmem:[#allocation6 + $0xe0] sm:$0xff]  ;;  %v78_v4 = vld [vmem:[#allocation6 + $0xd8] sm:$0xff]  ;;  %s217_s25 = sshll.u32 %s302_s24, 4  ;;  %s218_s25 = int_to_ptr.vmem [resolvable:$true] %s217_s25 }
  0x1c   :  { %116 = vmatpush1.msra.mxu0 %v81_v1  ;;  %v77_v5 = vld [vmem:[#allocation6 + $0xd0] sm:$0xff]  ;;  %v76_v6 = vld [vmem:[#allocation6 + $0xc8] sm:$0xff]  ;;  %v75_v7 = vld [vmem:[#allocation6 + $0xc0] sm:$0xff]  ;;  %s272_s26 = scalar_lea.vmem %s218_s25, 256  ;;  %p277_p11 = scmp.lt.s32.totalorder %s218_s25, %s218_s25 }
  0x1d   :  { %117 = vmatprep.subr.mxu0 %v80_v2  ;;  %v74_v8 = vld [vmem:[#allocation6 + $0xb8] sm:$0xff]  ;;  %v73_v9 = vld [vmem:[#allocation6 + $0xb0] sm:$0xff]  ;;  %v72_v10 = vld [vmem:[#allocation6 + $0xa8] sm:$0xff]  ;;  %v197_v2 = vlaneseq  ;;  %p273_p10 = scmp.ne.s32.totalorder %s218_s25, %s272_s26  ;;  %p278_p12 = scmp.lt.s32.totalorder %s272_s26, %s272_s26 }
  0x1e   :  { %118 = vmatpush1.msra.mxu0 %v79_v3  ;;  %v71_v11 = vld [vmem:[#allocation6 + $0xa0] sm:$0xff]  ;;  %v70_v12 = vld [vmem:[#allocation6 + $0x98] sm:$0xff]  ;;  %v69_v13 = vld [vmem:[#allocation6 + $0x90] sm:$0xff] }
  0x1f   :  { %119 = vmatprep.subr.mxu0 %v78_v4  ;;  %v68_v14 = vld [vmem:[#allocation6 + $0x88] sm:$0xff]  ;;  %v67_v15 = vld [vmem:[#allocation6 + $0x80] sm:$0xff]  ;;  %v66_v16 = vld [vmem:[#allocation6 + $0x78] sm:$0xff]  ;;  %v198_v3 = vshrl.u32 %v197_v2, 7  ;;  %p279_p13 = por %p278_p12, %p277_p11 }
  0x20   :  { %120 = vmatpush1.msra.mxu0 %v77_v5  ;;  %v65_v17 = vld [vmem:[#allocation6 + $0x70] sm:$0xff]  ;;  %v64_v18 = vld [vmem:[#allocation6 + $0x68] sm:$0xff]  ;;  %v63_v19 = vld [vmem:[#allocation6 + $0x60] sm:$0xff] }
  0x21   :  { %121 = vmatprep.subr.mxu0 %v76_v6  ;;  %v62_v20 = vld [vmem:[#allocation6 + $0x58] sm:$0xff]  ;;  %v61_v21 = vld [vmem:[#allocation6 + $0x50] sm:$0xff]  ;;  %v60_v22 = vld [vmem:[#allocation6 + $0x48] sm:$0xff]  ;;  %v199_v4 = vsub.s32 0, %v198_v3  ;;  %v203_v6 = vsub.s32 1, %v198_v3  ;;  %p280_p0 = pnand %p279_p13, %p273_p10 }
  0x22   :  { %122 = vmatpush1.msra.mxu0 %v75_v7  ;;  %v59_v23 = vld [vmem:[#allocation6 + $0x40] sm:$0xff]  ;;  %v50_v24 = vld [vmem:[#allocation3 + $0x8] sm:$0xff]  ;;  %v57_v26 = vld [vmem:[#allocation6 + $0x30] sm:$0xff] }
  0x23   :  { %123 = vmatprep.subr.mxu0 %v74_v8  ;;  %v58_v25 = vld [vmem:[#allocation6 + $0x38] sm:$0xff]  ;;  %179 = vmatprep.mubr.f32.mxu0 %v50_v24  ;;  %v56_v27 = vld [vmem:[#allocation6 + $0x28] sm:$0xff]  ;;  %v55_v28 = vld [vmem:[#allocation6 + $0x20] sm:$0xff] }
  0x24   :  { %124 = vmatpush1.msra.mxu0 %v73_v9  ;;  %v54_v29 = vld [vmem:[#allocation6 + $0x18] sm:$0xff]  ;;  %v53_v30 = vld [vmem:[#allocation6 + $0x10] sm:$0xff]  ;;  %v52_v31 = vld [vmem:[#allocation6 + $0x8] sm:$0xff] }
  0x25   :  { %125 = vmatprep.subr.mxu0 %v72_v10  ;;  %v51_v32 = vld [vmem:[#allocation6] sm:$0xff]  ;;  %v114_v33 = vld [vmem:[#allocation6 + $0x1f8] sm:$0xff]  ;;  %v113_v34 = vld [vmem:[#allocation6 + $0x1f0] sm:$0xff] }
  0x26   :  { %126 = vmatpush1.msra.mxu0 %v71_v11  ;;  %v112_v35 = vld [vmem:[#allocation6 + $0x1e8] sm:$0xff]  ;;  %v111_v36 = vld [vmem:[#allocation6 + $0x1e0] sm:$0xff]  ;;  %v110_v37 = vld [vmem:[#allocation6 + $0x1d8] sm:$0xff] }
  0x27   :  { %127 = vmatprep.subr.mxu0 %v70_v12  ;;  %v109_v38 = vld [vmem:[#allocation6 + $0x1d0] sm:$0xff]  ;;  %v108_v39 = vld [vmem:[#allocation6 + $0x1c8] sm:$0xff]  ;;  %v107_v40 = vld [vmem:[#allocation6 + $0x1c0] sm:$0xff] }
  0x28   :  { %128 = vmatpush1.msra.mxu0 %v69_v13  ;;  %v106_v41 = vld [vmem:[#allocation6 + $0x1b8] sm:$0xff]  ;;  %v105_v42 = vld [vmem:[#allocation6 + $0x1b0] sm:$0xff]  ;;  %v104_v43 = vld [vmem:[#allocation6 + $0x1a8] sm:$0xff] }
  0x29   :  { %129 = vmatprep.subr.mxu0 %v68_v14  ;;  %v103_v44 = vld [vmem:[#allocation6 + $0x1a0] sm:$0xff]  ;;  %v102_v45 = vld [vmem:[#allocation6 + $0x198] sm:$0xff]  ;;  %v101_v46 = vld [vmem:[#allocation6 + $0x190] sm:$0xff] }
  0x2a   :  { %130 = vmatpush1.msra.mxu0 %v67_v15  ;;  %v100_v47 = vld [vmem:[#allocation6 + $0x188] sm:$0xff]  ;;  %v99_v48 = vld [vmem:[#allocation6 + $0x180] sm:$0xff]  ;;  %v98_v49 = vld [vmem:[#allocation6 + $0x178] sm:$0xff] }
  0x2b   :  { %131 = vmatprep.subr.mxu0 %v66_v16  ;;  %v97_v50 = vld [vmem:[#allocation6 + $0x170] sm:$0xff]  ;;  %v96_v51 = vld [vmem:[#allocation6 + $0x168] sm:$0xff]  ;;  %v95_v52 = vld [vmem:[#allocation6 + $0x160] sm:$0xff] }
  0x2c   :  { %132 = vmatpush1.msra.mxu0 %v65_v17  ;;  %v94_v53 = vld [vmem:[#allocation6 + $0x158] sm:$0xff]  ;;  %v93_v54 = vld [vmem:[#allocation6 + $0x150] sm:$0xff]  ;;  %v92_v55 = vld [vmem:[#allocation6 + $0x148] sm:$0xff] }
  0x2d   :  { %133 = vmatprep.subr.mxu0 %v64_v18  ;;  %v91_v56 = vld [vmem:[#allocation6 + $0x140] sm:$0xff]  ;;  %v90_v57 = vld [vmem:[#allocation6 + $0x138] sm:$0xff]  ;;  %v89_v58 = vld [vmem:[#allocation6 + $0x130] sm:$0xff] }
  0x2e   :  { %134 = vmatpush1.msra.mxu0 %v63_v19  ;;  %v88_v59 = vld [vmem:[#allocation6 + $0x128] sm:$0xff]  ;;  %v87_v60 = vld [vmem:[#allocation6 + $0x120] sm:$0xff]  ;;  %v86_v61 = vld [vmem:[#allocation6 + $0x118] sm:$0xff] }
  0x2f   :  { %135 = vmatprep.subr.mxu0 %v62_v20  ;;  %v85_v62 = vld [vmem:[#allocation6 + $0x110] sm:$0xff]  ;;  %v84_v63 = vld [vmem:[#allocation6 + $0x108] sm:$0xff]  ;;  %v83_v0 = vld [vmem:[#allocation6 + $0x100] sm:$0xff] }
  0x30   :  { %136 = vmatpush1.msra.mxu0 %v61_v21  ;;  %v49_v1 = vld [vmem:[#allocation3] sm:$0xff] }
  0x31   :  { %137 = vmatprep.subr.mxu0 %v60_v22  ;;  %v195_v5 = vld [vmem:[%s337_s2] sm:$0x3] }
  0x32   :  { %138 = vmatpush1.msra.mxu0 %v59_v23  ;;  %v200_v7 = vrot.slane %v195_v5, %v199_v4  ;;  %v204_v8 = vrot.slane %v195_v5, %v203_v6 }
  0x33   :  { %139 = vmatprep.subr.mxu0 %v58_v25 }
  0x34   :  { %140 = vmatpush1.msra.mxu0 %v57_v26 }
  0x35   :  { %141 = vmatprep.subr.mxu0 %v56_v27 }
  0x36   :  { %142 = vmatpush1.msra.mxu0 %v55_v28 }
  0x37   :  { %143 = vmatprep.subr.mxu0 %v54_v29 }
  0x38   :  { %144 = vmatpush1.msra.mxu0 %v53_v30 }
  0x39   :  { %145 = vmatprep.subr.mxu0 %v52_v31 }
  0x3a   :  { %146 = vmatpush1.msra.mxu0 %v51_v32 }
  0x3b   :  { %147 = vmatprep.subr.mxu0 %v114_v33 }
  0x3c   :  { %148 = vmatpush2.msra.mxu0 %v113_v34 }
  0x3d   :  { %149 = vmatprep.subr.mxu0 %v112_v35 }
  0x3e   :  { %150 = vmatpush2.msra.mxu0 %v111_v36 }
  0x3f   :  { %151 = vmatprep.subr.mxu0 %v110_v37 }
  0x40   :  { %152 = vmatpush2.msra.mxu0 %v109_v38 }
  0x41   :  { %153 = vmatprep.subr.mxu0 %v108_v39 }
  0x42   :  { %154 = vmatpush2.msra.mxu0 %v107_v40 }
  0x43   :  { %155 = vmatprep.subr.mxu0 %v106_v41 }
  0x44   :  { %156 = vmatpush2.msra.mxu0 %v105_v42 }
  0x45   :  { %157 = vmatprep.subr.mxu0 %v104_v43 }
  0x46   :  { %158 = vmatpush2.msra.mxu0 %v103_v44 }
  0x47   :  { %159 = vmatprep.subr.mxu0 %v102_v45 }
  0x48   :  { %160 = vmatpush2.msra.mxu0 %v101_v46 }
  0x49   :  { %161 = vmatprep.subr.mxu0 %v100_v47 }
  0x4a   :  { %162 = vmatpush2.msra.mxu0 %v99_v48 }
  0x4b   :  { %163 = vmatprep.subr.mxu0 %v98_v49 }
  0x4c   :  { %164 = vmatpush2.msra.mxu0 %v97_v50 }
  0x4d   :  { %165 = vmatprep.subr.mxu0 %v96_v51 }
  0x4e   :  { %166 = vmatpush2.msra.mxu0 %v95_v52 }
  0x4f   :  { %167 = vmatprep.subr.mxu0 %v94_v53 }
  0x50   :  { %168 = vmatpush2.msra.mxu0 %v93_v54 }
  0x51   :  { %169 = vmatprep.subr.mxu0 %v92_v55 }
  0x52   :  { %170 = vmatpush2.msra.mxu0 %v91_v56 }
  0x53   :  { %171 = vmatprep.subr.mxu0 %v90_v57 }
  0x54   :  { %172 = vmatpush2.msra.mxu0 %v89_v58 }
  0x55   :  { %173 = vmatprep.subr.mxu0 %v88_v59 }
  0x56   :  { %174 = vmatpush2.msra.mxu0 %v87_v60 }
  0x57   :  { %175 = vmatprep.subr.mxu0 %v86_v61 }
  0x58   :  { %176 = vmatpush2.msra.mxu0 %v85_v62 }
  0x59   :  { %177 = vmatprep.subr.mxu0 %v84_v63 }
  0x5a   :  { %178 = vmatpush2.msra.mxu0 %v83_v0 }
  0x5b   :  { %180 = vmatmul.mubr.f32.vlgmr.msra.gmra.mxu0 %v49_v1 }
 0x11b   :  { %v181_v9 = vpop.f32.mrf.mxu0 }
 0x11c   :  { %v207_v10 = vadd.f32 %v200_v7, %v181_v9 }
 0x11d   :  { %v183_v11 = vpop.f32.mrf.mxu0 }
 0x11e   :  { %209 = vst [vmem:[#allocation8] sm:$0xff] %v207_v10  ;;  %v208_v12 = vadd.f32 %v204_v8, %v183_v11 }
 0x120   :  { %210 = vst [vmem:[#allocation8 + $0x8] sm:$0xff] %v208_v12 }
 0x121   :  { %283 = shalt.err (!%p280_p0)
}
 0x122   :  { %220 = dma.vmem_to_hbm [thread:$0]  %s218_s25, 256, %s338_s3, [#allocation5]  }
 0x123   :  { %296 = dma.done.wait [#allocation5], 256  }
 0x124   :  { %297 = vsyncadd [#allocation5], 4294967040 }
 0x125   :  { %224 = vsyncpa [#allocation4], 1 }
 0x126   :  { %225 = vsyncpa [#allocation7], 1 }
 0x127   :  { %226 = vsyncpa [#allocation5], 1 }

</bundles_post_ra>
